<compile_context>
chip_gen: v7x
topology: tpu7x:2x2x1
jax: 0.10.0
libtpu: 0.0.40
codegen_flags: <defaults>
</compile_context>

<pallas_src>
import jax
import jax.numpy as jnp
from jax.experimental import pallas as pl
from jax.experimental.pallas import tpu as pltpu

_NEG_BIG = -1e30  # padded-action bias: exp(-1e30 - m) == 0.0 exactly, no NaNs


def policy_kernel(x_ref, w1_ref, b1_ref, w2_ref, b2_ref, out_ref):
    # Number of real action columns (out_ref is unpadded along the action axis).
    n_act = out_ref.shape[1]

    # fc1: cast x to bf16 in-kernel (free VPU op), bf16 MXU matmul, f32 accumulate.
    x_bf = x_ref[...].astype(jnp.bfloat16)
    h = jnp.dot(x_bf, w1_ref[...], preferred_element_type=jnp.float32)
    h = jnp.maximum(h + b1_ref[...], 0.0)

    # fc2 over the lane-dense (128-wide, padded) action axis.
    logits = jnp.dot(h.astype(w2_ref.dtype), w2_ref[...],
                     preferred_element_type=jnp.float32)
    logits = logits + b2_ref[...]  # padded columns carry -1e30

    # Numerically stable softmax along dim=1 (action axis).  Padded columns
    # contribute exactly 0 to the denominator, so normalizing over the padded
    # slab equals normalizing over the real columns.
    m = jnp.max(logits, axis=1, keepdims=True)
    e = jnp.exp(logits - m)
    denom = jnp.sum(e, axis=1, keepdims=True)
    out_ref[...] = (e[:, :n_act] / denom).astype(out_ref.dtype)


def policy_forward(x, w1, b1, w2, b2, *, block_b=4096):
    """x: [B, S] f32; w1: [S, H]; b1: [1, H]; w2: [H, A]; b2: [1, A] -> probs [B, A] f32."""
    B, S = x.shape
    H = w1.shape[1]
    A = w2.shape[1]

    # Lane-dense action axis for the in-kernel MXU pass only.
    A_pad = ((A + 127) // 128) * 128

    # Sublane-aligned batch tiling.
    B_sub = ((B + 7) // 8) * 8
    TB = min(block_b, B_sub)
    TB = ((TB + 7) // 8) * 8
    # Prefer >=2 grid steps for big batches so the 'parallel' axis actually
    # shards across both v7x TensorCores.
    if TB == B_sub and B_sub >= 2048:
        TB = ((B_sub // 2 + 7) // 8) * 8
    num_blocks = pl.cdiv(B_sub, TB)
    B_pad = num_blocks * TB

    # Wrapper-side padding / dtype prep (x stays f32; cast happens in-kernel).
    x_p = x.astype(jnp.float32)
    if B_pad != B:
        x_p = jnp.pad(x_p, ((0, B_pad - B), (0, 0)))
    w1_bf = w1.astype(jnp.bfloat16)
    w2_bf = jnp.pad(w2, ((0, 0), (0, A_pad - A))).astype(jnp.bfloat16)
    b1_f32 = b1.astype(jnp.float32)
    b2_f32 = jnp.full((1, A_pad), _NEG_BIG, jnp.float32).at[:, :A].set(
        b2.astype(jnp.float32))

    cost = pl.CostEstimate(
        flops=int(2 * B_pad * S * H + 2 * B_pad * H * A_pad),
        transcendentals=int(B_pad * A_pad),
        bytes_accessed=int(
            B_pad * S * 4                      # x (f32 in)
            + w1_bf.size * 2 + w2_bf.size * 2  # weights (bf16)
            + b1_f32.size * 4 + b2_f32.size * 4
            + B_pad * A * 4),                  # unpadded f32 output
    )

    out_padded = pl.pallas_call(
        policy_kernel,
        out_shape=jax.ShapeDtypeStruct((B_pad, A), jnp.float32),
        grid=(num_blocks,),
        in_specs=[
            pl.BlockSpec((TB, S), lambda i: (i, 0)),       # x tile (pipelined)
            pl.BlockSpec((S, H), lambda i: (0, 0)),        # w1 resident
            pl.BlockSpec((1, H), lambda i: (0, 0)),        # b1 resident
            pl.BlockSpec((H, A_pad), lambda i: (0, 0)),    # w2 (padded) resident
            pl.BlockSpec((1, A_pad), lambda i: (0, 0)),    # b2 (padded) resident
        ],
        out_specs=pl.BlockSpec((TB, A), lambda i: (i, 0)),  # only real actions
        compiler_params=pltpu.CompilerParams(
            dimension_semantics=("parallel",)),
        cost_estimate=cost,
    )(x_p, w1_bf, b1_f32, w2_bf, b2_f32)

    if B_pad != B:
        return out_padded[:B, :]
    return out_padded


def init_params(key, state_size, action_size, hidden_size=128):
    """Deterministic init mimicking PyTorch nn.Linear default (uniform +/- 1/sqrt(fan_in))."""
    k1, k2, k3, k4 = jax.random.split(key, 4)
    lim1 = 1.0 / jnp.sqrt(jnp.float32(state_size))
    lim2 = 1.0 / jnp.sqrt(jnp.float32(hidden_size))
    w1 = jax.random.uniform(k1, (state_size, hidden_size), jnp.float32, -lim1, lim1)
    b1 = jax.random.uniform(k2, (1, hidden_size), jnp.float32, -lim1, lim1)
    w2 = jax.random.uniform(k3, (hidden_size, action_size), jnp.float32, -lim2, lim2)
    b2 = jax.random.uniform(k4, (1, action_size), jnp.float32, -lim2, lim2)
    return w1, b1, w2, b2


if __name__ == "__main__":
    # Small shapes consistent with the module: batch=8, state_size=16,
    # hidden=128, action_size=8.
    batch, state_size, action_size, hidden_size = 8, 16, 8, 128

    key = jax.random.PRNGKey(0)
    kx, kp = jax.random.split(key)
    x = jax.random.normal(kx, (batch, state_size), jnp.float32)
    w1, b1, w2, b2 = init_params(kp, state_size, action_size, hidden_size)

    probs = policy_forward(x, w1, b1, w2, b2)
    probs = jax.block_until_ready(probs)

    # Reference check (plain f32 JAX).  Tolerance accounts for bf16 MXU operands;
    # the softmax normalization itself is exact f32 division.
    h_ref = jnp.maximum(x @ w1 + b1, 0.0)
    logits_ref = h_ref @ w2 + b2
    ref = jax.nn.softmax(logits_ref, axis=1)
    assert probs.shape == (batch, action_size)
    assert jnp.allclose(probs, ref, atol=1e-2, rtol=1e-2)
    assert jnp.allclose(jnp.sum(probs, axis=1), 1.0, atol=1e-3)
    assert bool(jnp.all(probs >= 0.0))

    print("KERNEL_OK")
</pallas_src>

<mosaic_0001>
module attributes {stable_mosaic.version = 11 : i64} {
  func.func @policy_kernel(%arg0: i32, %arg1: memref<8x16xf32, #tpu.memory_space<vmem>>, %arg2: memref<16x128xbf16, #tpu.memory_space<vmem>>, %arg3: memref<1x128xf32, #tpu.memory_space<vmem>>, %arg4: memref<128x128xbf16, #tpu.memory_space<vmem>>, %arg5: memref<1x128xf32, #tpu.memory_space<vmem>>, %arg6: memref<8x8xf32, #tpu.memory_space<vmem>>) attributes {dimension_semantics = [#tpu.dimension_semantics<parallel>], iteration_bounds = array<i64: 1>, scalar_prefetch = 0 : i64, scratch_operands = 0 : i64, tpu.core_type = #tpu.core_type<tc>, window_params = [{transform_indices = @transform_0, window_bounds = array<i64: 8, 16>}, {pipeline_mode = #tpu.pipeline_mode<synchronous>, transform_indices = @transform_1, window_bounds = array<i64: 16, 128>}, {pipeline_mode = #tpu.pipeline_mode<synchronous>, transform_indices = @transform_2, window_bounds = array<i64: 1, 128>}, {pipeline_mode = #tpu.pipeline_mode<synchronous>, transform_indices = @transform_3, window_bounds = array<i64: 128, 128>}, {pipeline_mode = #tpu.pipeline_mode<synchronous>, transform_indices = @transform_4, window_bounds = array<i64: 1, 128>}, {transform_indices = @transform_5, window_bounds = array<i64: 8, 8>}]} {
    %c0 = arith.constant 0 : index
    %c0_0 = arith.constant 0 : index
    %0 = vector.load %arg1[%c0, %c0_0] : memref<8x16xf32, #tpu.memory_space<vmem>>, vector<8x16xf32>
    %1 = arith.truncf %0 : vector<8x16xf32> to vector<8x16xbf16>
    %c0_1 = arith.constant 0 : index
    %c0_2 = arith.constant 0 : index
    %2 = vector.load %arg2[%c0_1, %c0_2] : memref<16x128xbf16, #tpu.memory_space<vmem>>, vector<16x128xbf16>
    %cst = arith.constant dense<0.000000e+00> : vector<8x128xf32>
    %3 = tpu.matmul %1, %2, %cst {dimension_numbers = #tpu.dot_dimension_numbers<[1], [0], [0], [1], [0, 0, 1, 1], [], []>} : vector<8x16xbf16>, vector<16x128xbf16>, vector<8x128xf32> -> vector<8x128xf32>
    %c0_3 = arith.constant 0 : index
    %c0_4 = arith.constant 0 : index
    %4 = vector.load %arg3[%c0_3, %c0_4] : memref<1x128xf32, #tpu.memory_space<vmem>>, vector<1x128xf32>
    %5 = vector.broadcast %4 : vector<1x128xf32> to vector<8x128xf32>
    %6 = arith.addf %3, %5 : vector<8x128xf32>
    %cst_5 = arith.constant 0.000000e+00 : f32
    %7 = vector.broadcast %cst_5 : f32 to vector<8x128xf32>
    %8 = arith.maximumf %6, %7 : vector<8x128xf32>
    %9 = arith.truncf %8 : vector<8x128xf32> to vector<8x128xbf16>
    %c0_6 = arith.constant 0 : index
    %c0_7 = arith.constant 0 : index
    %10 = vector.load %arg4[%c0_6, %c0_7] : memref<128x128xbf16, #tpu.memory_space<vmem>>, vector<128x128xbf16>
    %cst_8 = arith.constant dense<0.000000e+00> : vector<8x128xf32>
    %11 = tpu.matmul %9, %10, %cst_8 {dimension_numbers = #tpu.dot_dimension_numbers<[1], [0], [0], [1], [0, 0, 1, 1], [], []>} : vector<8x128xbf16>, vector<128x128xbf16>, vector<8x128xf32> -> vector<8x128xf32>
    %c0_9 = arith.constant 0 : index
    %c0_10 = arith.constant 0 : index
    %12 = vector.load %arg5[%c0_9, %c0_10] : memref<1x128xf32, #tpu.memory_space<vmem>>, vector<1x128xf32>
    %13 = vector.broadcast %12 : vector<1x128xf32> to vector<8x128xf32>
    %14 = arith.addf %11, %13 : vector<8x128xf32>
    %cst_11 = arith.constant dense<0xFF800000> : vector<8xf32>
    %15 = vector.multi_reduction <maximumf>, %14, %cst_11 [1] : vector<8x128xf32> to vector<8xf32>
    %16 = vector.shape_cast %15 : vector<8xf32> to vector<8x1xf32>
    %17 = vector.broadcast %16 : vector<8x1xf32> to vector<8x128xf32>
    %18 = arith.subf %14, %17 : vector<8x128xf32>
    %19 = math.exp %18 : vector<8x128xf32>
    %cst_12 = arith.constant dense<0.000000e+00> : vector<8xf32>
    %20 = vector.multi_reduction <add>, %19, %cst_12 [1] : vector<8x128xf32> to vector<8xf32>
    %21 = vector.shape_cast %20 : vector<8xf32> to vector<8x1xf32>
    %22 = vector.extract_strided_slice %19 {offsets = [0, 0], sizes = [8, 8], strides = [1, 1]} : vector<8x128xf32> to vector<8x8xf32>
    %23 = vector.broadcast %21 : vector<8x1xf32> to vector<8x8xf32>
    %24 = arith.divf %22, %23 : vector<8x8xf32>
    %c0_13 = arith.constant 0 : index
    %c0_14 = arith.constant 0 : index
    %25 = vector.load %arg6[%c0_13, %c0_14] : memref<8x8xf32, #tpu.memory_space<vmem>>, vector<8x8xf32>
    tpu.vector_store %arg6[%c0_13, %c0_14], %24 {strides = array<i32>} : memref<8x8xf32, #tpu.memory_space<vmem>>, vector<8x8xf32>,
    return
  }
  func.func @transform_0(%arg0: i32) -> (i32, i32) {
    %c0_i32 = arith.constant 0 : i32
    %c0_i32_0 = arith.constant 0 : i32
    return %arg0, %c0_i32 : i32, i32
  }
  func.func @transform_1(%arg0: i32) -> (i32, i32) {
    %c0_i32 = arith.constant 0 : i32
    %c0_i32_0 = arith.constant 0 : i32
    %c0_i32_1 = arith.constant 0 : i32
    return %c0_i32, %c0_i32_0 : i32, i32
  }
  func.func @transform_2(%arg0: i32) -> (i32, i32) {
    %c0_i32 = arith.constant 0 : i32
    %c0_i32_0 = arith.constant 0 : i32
    %c0_i32_1 = arith.constant 0 : i32
    return %c0_i32, %c0_i32_0 : i32, i32
  }
  func.func @transform_3(%arg0: i32) -> (i32, i32) {
    %c0_i32 = arith.constant 0 : i32
    %c0_i32_0 = arith.constant 0 : i32
    %c0_i32_1 = arith.constant 0 : i32
    return %c0_i32, %c0_i32_0 : i32, i32
  }
  func.func @transform_4(%arg0: i32) -> (i32, i32) {
    %c0_i32 = arith.constant 0 : i32
    %c0_i32_0 = arith.constant 0 : i32
    %c0_i32_1 = arith.constant 0 : i32
    return %c0_i32, %c0_i32_0 : i32, i32
  }
  func.func @transform_5(%arg0: i32) -> (i32, i32) {
    %c0_i32 = arith.constant 0 : i32
    %c0_i32_0 = arith.constant 0 : i32
    return %arg0, %c0_i32 : i32, i32
  }
}

</mosaic_0001>

<bundles_post_ra>
// kernel: tpu_custom_call.1
= control target key start
LH: loop header
LB: loop body
LE: loop exit
PB: predicated region body
PF: predicated region fallthrough
CT: control target
= control target key end

     0   :  { %10 = vsyncpa [#allocation3], 0  ;;  %s524_s0 = inlined_call_operand.hbm [shape: f32[8,16], index: 0, kind: input, shape index: {}]   ;;  %s525_s1 = inlined_call_operand.hbm [shape: bf16[16,128], index: 1, kind: input, shape index: {}]   ;;  %s526_s2 = inlined_call_operand.vmem [shape: f32[1,128], index: 2, kind: input, shape index: {}]   ;;  %s527_s3 = inlined_call_operand.hbm [shape: bf16[128,128], index: 3, kind: input, shape index: {}]   ;;  %s528_s4 = inlined_call_operand.vmem [shape: f32[1,128], index: 4, kind: input, shape index: {}]   ;;  %s529_s5 = inlined_call_operand.hbm [shape: f32[8,8], index: 5, kind: output, shape index: {}]  }
   0x1   :  { %11 = vsyncpa [#allocation6], 0 }
   0x2   :  { %12 = vsyncpa [#allocation4], 0  ;;  %s426_s18 = smov [#allocation5]   ;;  %s332_s22 = scalar_lea.hbm %s525_s1, 128 }
   0x3   :  { %s28_s19 = sshll.u32 %s426_s18, 4  ;;  %p333_p0 = scmp.ne.s32.totalorder %s525_s1, %s332_s22  ;;  %s29_s19 = int_to_ptr.vmem [resolvable:$true] %s28_s19 }
   0x4   :  { %p336_p1 = scmp.lt.u32.totalorder %s332_s22, %s525_s1 }
   0x6   :  { %p338_p2 = pnand %p336_p1, %p333_p0 }
   0x8   :  { %341 = shalt.err (!%p338_p2)
}
   0x9   :  { %s342_s27 = scalar_lea.vmem %s29_s19, 128  ;;  %p347_p4 = scmp.lt.s32.totalorder %s29_s19, %s29_s19 }
   0xa   :  { %p343_p3 = scmp.ne.s32.totalorder %s29_s19, %s342_s27  ;;  %p348_p5 = scmp.lt.s32.totalorder %s342_s27, %s342_s27 }
   0xc   :  { %p349_p6 = por %p348_p5, %p347_p4 }
   0xe   :  { %p350_p7 = pnand %p349_p6, %p343_p3 }
  0x10   :  { %353 = shalt.err (!%p350_p7)
}
  0x11   :  { %s427_s28 = smov 64   ;;  %s428_s29 = smov 4  }
  0x12   :  { %34 = dma.hbm_to_vmem [thread:$0]  %s525_s1, 128, %s29_s19, [#allocation6], %s427_s28, %s427_s28, %s428_s29  }
  0x13   :  { %s429_s7 = smov [#allocation2]   ;;  %s430_s9 = smov [#allocation7]  }
  0x14   :  { %s19_s8 = sshll.u32 %s429_s7, 4  ;;  %s42_s10 = sshll.u32 %s430_s9, 4  ;;  %s20_s8 = int_to_ptr.vmem [resolvable:$true] %s19_s8  ;;  %s43_s10 = int_to_ptr.vmem [resolvable:$true] %s42_s10 }
  0x15   :  { %s354_s13 = scalar_lea.hbm %s524_s0, 128 }
  0x16   :  { %p355_p8 = scmp.ne.s32.totalorder %s524_s0, %s354_s13  ;;  %p358_p9 = scmp.lt.u32.totalorder %s354_s13, %s524_s0 }
  0x18   :  { %p360_p10 = pnand %p358_p9, %p355_p8 }
  0x1a   :  { %363 = shalt.err (!%p360_p10)
}
  0x1b   :  { %s364_s1 = scalar_lea.vmem %s20_s8, 128  ;;  %p369_p12 = scmp.lt.s32.totalorder %s20_s8, %s20_s8 }
  0x1c   :  { %p365_p11 = scmp.ne.s32.totalorder %s20_s8, %s364_s1  ;;  %p370_p13 = scmp.lt.s32.totalorder %s364_s1, %s364_s1 }
  0x1e   :  { %p371_p0 = por %p370_p13, %p369_p12 }
  0x20   :  { %p372_p1 = pnand %p371_p0, %p365_p11 }
  0x22   :  { %375 = shalt.err (!%p372_p1)
}
  0x23   :  { %22 = dma.hbm_to_vmem [thread:$0]  %s524_s0, 128, %s20_s8, [#allocation3]  }
  0x24   :  { %s376_s22 = scalar_lea.hbm %s527_s3, 1024 }
  0x25   :  { %p377_p2 = scmp.ne.s32.totalorder %s527_s3, %s376_s22  ;;  %p380_p3 = scmp.lt.u32.totalorder %s376_s22, %s527_s3 }
  0x27   :  { %p382_p4 = pnand %p380_p3, %p377_p2 }
  0x29   :  { %385 = shalt.err (!%p382_p4)
}
  0x2a   :  { %s386_s27 = scalar_lea.vmem %s43_s10, 1024  ;;  %p391_p6 = scmp.lt.s32.totalorder %s43_s10, %s43_s10 }
  0x2b   :  { %p387_p5 = scmp.ne.s32.totalorder %s43_s10, %s386_s27  ;;  %p392_p7 = scmp.lt.s32.totalorder %s386_s27, %s386_s27 }
  0x2d   :  { %p393_p8 = por %p392_p7, %p391_p6 }
  0x2f   :  { %p394_p9 = pnand %p393_p8, %p387_p5 }
  0x31   :  { %397 = shalt.err (!%p394_p9)
}
  0x32   :  { %48 = dma.hbm_to_vmem [thread:$0]  %s527_s3, 1024, %s43_s10, [#allocation6], %s427_s28, %s427_s28, %s428_s29  }
  0x33   :  { %420 = dma.done.wait [#allocation3], 128  }
  0x34   :  { %421 = vsyncadd [#allocation3], 4294967168 }
  0x35   :  { %422 = dma.done.wait [#allocation6], 1152  }
  0x36   :  { %423 = vsyncadd [#allocation6], 4294966144  ;;  %v431_v0 = vmov 0.0   ;;  %vm432_vm0 = vmmov 0   ;;  %v319_v1 = vld [vmem:[#allocation5] sm:$0xff]   ;;  %v61_v2 = vld [vmem:[#allocation2] sm:$0xff] }
  0x37   :  { %285 = vmatprep.subr.bf16.mxu0 %v431_v0  ;;  %287 = vmatprep.mubr.msk.bf16.mxu0 %vm432_vm0, %v431_v0  ;;  %v62_v3 = vpack.c.bf16 %v61_v2, %v61_v2  ;;  %vm78_vm1 = vcmask 130048   ;;  %v320_v4 = vld [vmem:[#allocation7] sm:$0xff]   ;;  %v321_v5 = vld [vmem:[#allocation7 + $0x8] sm:$0xff]   ;;  %v322_v6 = vld [vmem:[#allocation7 + $0x10] sm:$0xff]   ;;  %vm244_vm2 = vcmask 64512  }
  0x38   :  { %291 = vmatprep.subr.bf16.mxu1 %v431_v0  ;;  %307 = vmatprep.mubr.msk.bf16.mxu1 %vm432_vm0, %v431_v0  ;;  %v323_v7 = vld [vmem:[#allocation7 + $0x18] sm:$0xff]   ;;  %v324_v8 = vld [vmem:[#allocation7 + $0x20] sm:$0xff]   ;;  %v325_v9 = vld [vmem:[#allocation7 + $0x28] sm:$0xff]  }
  0x39   :  { %286 = vmatpush3.bf16.msra.mxu0 %v319_v1  ;;  %292 = vmatpush3.bf16.msra.mxu1 %v320_v4  ;;  %v326_v10 = vld [vmem:[#allocation7 + $0x30] sm:$0xff]   ;;  %v327_v11 = vld [vmem:[#allocation7 + $0x38] sm:$0xff]  }
  0x3a   :  { %293 = vmatprep.subr.bf16.mxu1 %v431_v0  ;;  %v262_v12 = vld [vmem:[%s526_s2] ss:$0 sm:$0xff]  ;;  %s433_s2 = smov [#allocation8]  }
  0x3b   :  { %v265_v20 = vld [vmem:[%s528_s4] ss:$0 sm:$0xff]  ;;  %s252_s7 = sshll.u32 %s433_s2, 4  ;;  %s253_s7 = int_to_ptr.vmem [resolvable:$true] %s252_s7 }
  0x3c   :  { %288 = vmatmul.mubr.msk.bf16.vlgmr.msra.gmra.mrb[0].mxu0 %vm78_vm1, %v62_v3  ;;  %s398_s4 = scalar_lea.vmem %s253_s7, 128  ;;  %p403_p11 = scmp.lt.s32.totalorder %s253_s7, %s253_s7 }
  0x3d   :  { %294 = vmatpush3.bf16.msra.mxu1 %v321_v5  ;;  %p399_p10 = scmp.ne.s32.totalorder %s253_s7, %s398_s4  ;;  %p404_p12 = scmp.lt.s32.totalorder %s398_s4, %s398_s4 }
  0x3e   :  { %295 = vmatprep.subr.bf16.mxu1 %v431_v0 }
  0x3f   :  { %p405_p13 = por %p404_p12, %p403_p11 }
  0x41   :  { %296 = vmatpush3.bf16.msra.mxu1 %v322_v6  ;;  %p406_p0 = pnand %p405_p13, %p399_p10 }
  0x42   :  { %297 = vmatprep.subr.bf16.mxu1 %v431_v0 }
  0x45   :  { %298 = vmatpush3.bf16.msra.mxu1 %v323_v7 }
  0x46   :  { %299 = vmatprep.subr.bf16.mxu1 %v431_v0 }
  0x49   :  { %300 = vmatpush3.bf16.msra.mxu1 %v324_v8 }
  0x4a   :  { %301 = vmatprep.subr.bf16.mxu1 %v431_v0 }
  0x4d   :  { %302 = vmatpush3.bf16.msra.mxu1 %v325_v9 }
  0x4e   :  { %303 = vmatprep.subr.bf16.mxu1 %v431_v0 }
  0x51   :  { %304 = vmatpush3.bf16.msra.mxu1 %v326_v10 }
  0x52   :  { %305 = vmatprep.subr.bf16.mxu1 %v431_v0 }
  0x55   :  { %306 = vmatpush3.bf16.msra.mxu1 %v327_v11 }
 0x10f   :  { %v116_v13 = vpop.f32.mrb[0].mxu0 }
 0x110   :  { %v117_v14 = vadd.f32 %v262_v12, %v116_v13  ;;  %v289_v15 = vpop.f32.mrb[1].mxu0 }
 0x111   :  { %v119_v16 = vpop.f32.mrb[2].mxu0 }
 0x112   :  { %v122_v17 = vmax.f32 %v117_v14, 0.0  ;;  %v290_v18 = vpop.f32.mrb[3].mxu0 }
 0x114   :  { %v123_v19 = vpack.c.bf16 %v122_v17, %v122_v17 }
 0x116   :  { %308 = vmatmul.mubr.bf16.vlgmr.msra.gmra.mrb[0].mxu1 %v123_v19 }
 0x1e9   :  { %v229_v21 = vpop.f32.mrb[0].mxu1 }
 0x1ea   :  { %v230_v22 = vadd.f32 %v265_v20, %v229_v21  ;;  %v309_v23 = vpop.f32.mrb[1].mxu1 }
 0x1eb   :  { %v232_v24 = vpop.f32.mrb[2].mxu1 }
 0x1ec   :  { %235 = vmax.xlane.f32.xlu0 %v230_v22  ;;  %v310_v25 = vpop.f32.mrb[3].mxu1 }
 0x279   :  { %v236_v26 = vpop.xlane.xlu0 %235 }
 0x27a   :  { %v237_v27 = vsub.f32 %v230_v22, %v236_v26 }
 0x27c   :  { %v238_v28 = vmul.f32 1.442695, %v237_v27 }
 0x27e   :  { %328 = vpow2.f32 %v238_v28 }
 0x288   :  { %v329_v29 = vpop.eup %328 }
 0x289   :  { %240 = vadd.xlane.f32.xlu0 %v329_v29 }
 0x316   :  { %v241_v30 = vpop.xlane.xlu0 %240 }
 0x317   :  { %330 = vrcp.f32 %v241_v30 }
 0x321   :  { %v331_v31 = vpop.eup %330 }
 0x322   :  { %v243_v32 = vmul.f32 %v331_v31, %v329_v29 }
 0x324   :  { %245 = vst.msk [vmem:[#allocation8] sm:$0xff] %vm244_vm2, %v243_v32 }
 0x325   :  { %409 = shalt.err (!%p406_p0)
}
 0x326   :  { %s410_s10 = scalar_lea.hbm %s529_s5, 128 }
 0x327   :  { %p411_p1 = scmp.ne.s32.totalorder %s529_s5, %s410_s10  ;;  %p414_p2 = scmp.lt.u32.totalorder %s410_s10, %s529_s5 }
 0x329   :  { %p416_p3 = pnand %p414_p2, %p411_p1 }
 0x32b   :  { %419 = shalt.err (!%p416_p3)
}
 0x32c   :  { %255 = dma.vmem_to_hbm [thread:$0]  %s253_s7, 128, %s529_s5, [#allocation4]  }
 0x32d   :  { %424 = dma.done.wait [#allocation4], 128  }
 0x32e   :  { %425 = vsyncadd [#allocation4], 4294967168 }
 0x32f   :  { %259 = vsyncpa [#allocation3], 1 }
 0x330   :  { %260 = vsyncpa [#allocation6], 1 }
 0x331   :  { %261 = vsyncpa [#allocation4], 1 }

</bundles_post_ra>
